<compile_context>
chip_gen: v6e
topology: v6e:2x2x1
jax: 0.10.0
libtpu: 0.0.40
codegen_flags: <defaults>
</compile_context>

<pallas_src>
import functools

import jax
import jax.numpy as jnp
from jax.experimental import pallas as pl
from jax.experimental.pallas import tpu as pltpu

# ----------------------------- config (small, test-sized) -----------------------------
BATCH = 2
IN_CH = 3
IMG = 16
PATCH = 4
NUM_TOKENS = (IMG // PATCH) * (IMG // PATCH)      # 16
PATCH_DIM = IN_CH * PATCH * PATCH                 # 48
EMBED_DIM = 128                                   # stand-in for backbone.num_features
NUM_PRIMARY = 8                                   # num_primary_classes

C_PAD = 128            # class dim padded so the logits store is an unmasked, lane-dense vst
MAX_BATCH_TILE = 512   # 256-512 row tiles amortize the ~0.35us/step grid overhead


def _round_up(x: int, m: int) -> int:
    return ((x + m - 1) // m) * m


def _pick_batch_tile(batch: int) -> int:
    """Sublane-aligned batch tile: whole batch when small; 256-512 rows and >=2 grid
    steps (v7x dual-TensorCore sharding) when large."""
    bp = _round_up(batch, 8)
    if bp <= 256:
        return bp
    return min(MAX_BATCH_TILE, _round_up((bp + 1) // 2, 8))


# ----------------------------- Pallas kernel -----------------------------
def hier_cnn_kernel(x_ref, w_eff_ref, b_emb_ref, w_head_ref, b_head_ref,
                    logits_ref, feat_ref):
    # x_ref:      [TB, CHW] f32  (flat image rows; CHW = C*H*W)
    # w_eff_ref:  [CHW, D]  f32  (patch-embed weight tiled over the patch grid, /P)
    # b_emb_ref:  [1, D]    f32
    # w_head_ref: [D, Cp]   f32
    # b_head_ref: [1, Cp]   f32
    # logits_ref: [TB, Cp]  f32  (lane-dense; sliced to NUM_PRIMARY in the wrapper)
    # feat_ref:   [TB, D]   f32
    #
    # Backbone stand-in (patch embed + global average pool) folded into one MXU
    # matmul with f32 accumulation; then the primary head on the pooled features.
    feat = jnp.dot(x_ref[...], w_eff_ref[...],
                   preferred_element_type=jnp.float32) + b_emb_ref[...]
    feat_ref[...] = feat
    logits_ref[...] = jnp.dot(feat, w_head_ref[...],
                              preferred_element_type=jnp.float32) + b_head_ref[...]


# ----------------------------- wrapper -----------------------------
@functools.partial(jax.jit, static_argnames=("batch_tile",))
def hierarchical_cnn_forward(x_nchw, w_emb, b_emb, w_head, b_head, *, batch_tile=None):
    """x_nchw: [B, C, H, W] float32.
    Returns (primary_logits [B, num_classes], feat [B, EMBED_DIM])."""
    B, C, H, W = x_nchw.shape
    hp, wp = H // PATCH, W // PATCH
    P = hp * wp
    CHW = C * H * W
    D = w_emb.shape[1]
    num_classes = w_head.shape[1]

    # GAP over the patch grid commutes with the per-token linear embed, so the whole
    # backbone stand-in is one linear map applied to the flat image:
    #   feat[b, d] = sum_{c,h,w} x[b,c,h,w] * w_emb[(c, h%PATCH, w%PATCH), d] / P + b_emb[d]
    # Build that weight once (weight-sized work, ~CHW*D*4 bytes); x itself is only
    # reshaped (contiguous flatten, no copy) and read by the kernel exactly once.
    w_eff = jnp.broadcast_to(
        w_emb.reshape(C, 1, PATCH, 1, PATCH, D),
        (C, hp, PATCH, wp, PATCH, D)).reshape(CHW, D) * (1.0 / P)

    x_flat = x_nchw.reshape(B, CHW).astype(jnp.float32)

    # Pad class dim to 128 lanes for an unmasked logits store; pad batch to the tile grid.
    w_head_p = jnp.pad(w_head, ((0, 0), (0, C_PAD - num_classes)))
    b_head_p = jnp.pad(b_head, ((0, 0), (0, C_PAD - num_classes)))

    bt = batch_tile if batch_tile is not None else _pick_batch_tile(B)
    grid_b = (B + bt - 1) // bt
    Bp = grid_b * bt
    x_flat = jnp.pad(x_flat, ((0, Bp - B), (0, 0)))

    # Per-step VMEM @ bt=512 (prod-sized): x 1.5 MiB + outs 0.5 MiB, x2 buffers, plus
    # ~0.5 MiB resident weights ~= 5 MiB -> fits v5e's 16 MiB scoped default and
    # v7x's 32 MiB scoped / 64 MiB physical limits; no vmem_limit override needed.
    logits_p, feat = pl.pallas_call(
        hier_cnn_kernel,
        out_shape=(
            jax.ShapeDtypeStruct((Bp, C_PAD), jnp.float32),
            jax.ShapeDtypeStruct((Bp, D), jnp.float32),
        ),
        grid=(grid_b,),
        in_specs=[
            pl.BlockSpec((bt, CHW), lambda i: (i, 0)),
            # TODO(synk): the four resident weight/bias specs could take
            # pipeline_mode=pl.Buffered(1) to skip double-buffering (~0.5 MiB VMEM);
            # left at the default to keep the lowering maximally portable.
            pl.BlockSpec((CHW, D), lambda i: (0, 0)),
            pl.BlockSpec((1, D), lambda i: (0, 0)),
            pl.BlockSpec((D, C_PAD), lambda i: (0, 0)),
            pl.BlockSpec((1, C_PAD), lambda i: (0, 0)),
        ],
        out_specs=(
            pl.BlockSpec((bt, C_PAD), lambda i: (i, 0)),
            pl.BlockSpec((bt, D), lambda i: (i, 0)),
        ),
        compiler_params=pltpu.CompilerParams(
            dimension_semantics=("parallel",)),
    )(x_flat, w_eff, b_emb.astype(jnp.float32), w_head_p, b_head_p)

    return logits_p[:B, :num_classes], feat[:B]


# ----------------------------- deterministic params + run -----------------------------
if __name__ == "__main__":
    key = jax.random.PRNGKey(0)
    k_x, k_we, k_be, k_wh, k_bh = jax.random.split(key, 5)

    x = jax.random.normal(k_x, (BATCH, IN_CH, IMG, IMG), dtype=jnp.float32)

    # Stand-in backbone patch-embed params.
    w_emb = jax.random.normal(k_we, (PATCH_DIM, EMBED_DIM), dtype=jnp.float32) * 0.02
    b_emb = jax.random.normal(k_be, (1, EMBED_DIM), dtype=jnp.float32) * 0.02
    # primary_head params (stored pre-transposed: [in_features, num_classes]).
    w_head = jax.random.normal(k_wh, (EMBED_DIM, NUM_PRIMARY), dtype=jnp.float32) * 0.02
    b_head = jax.random.normal(k_bh, (1, NUM_PRIMARY), dtype=jnp.float32) * 0.02

    logits, feat = hierarchical_cnn_forward(x, w_emb, b_emb, w_head, b_head)
    jax.block_until_ready((logits, feat))

    # Pure-JAX f32 reference with the original op order (per-token patch embed,
    # then GAP, then head).  The kernel folds embed+GAP into a single linear map —
    # mathematically identical.
    hp = wp = IMG // PATCH
    patches_ref = x.reshape(BATCH, IN_CH, hp, PATCH, wp, PATCH)
    patches_ref = patches_ref.transpose(0, 2, 4, 1, 3, 5).reshape(
        BATCH, NUM_TOKENS, PATCH_DIM)
    feat_ref = jnp.mean(patches_ref @ w_emb + b_emb, axis=1)
    logits_ref = feat_ref @ w_head + b_head

    assert logits.shape == (BATCH, NUM_PRIMARY) and feat.shape == (BATCH, EMBED_DIM)
    assert jnp.allclose(feat, feat_ref, atol=5e-3, rtol=5e-3)
    assert jnp.allclose(logits, logits_ref, atol=5e-3, rtol=5e-3)

    print("KERNEL_OK")
</pallas_src>

<mosaic_0001>
module attributes {stable_mosaic.version = 11 : i64} {
  func.func @hier_cnn_kernel(%arg0: i32, %arg1: memref<8x768xf32, #tpu.memory_space<vmem>>, %arg2: memref<768x128xf32, #tpu.memory_space<vmem>>, %arg3: memref<1x128xf32, #tpu.memory_space<vmem>>, %arg4: memref<128x128xf32, #tpu.memory_space<vmem>>, %arg5: memref<1x128xf32, #tpu.memory_space<vmem>>, %arg6: memref<8x128xf32, #tpu.memory_space<vmem>>, %arg7: memref<8x128xf32, #tpu.memory_space<vmem>>) attributes {dimension_semantics = [#tpu.dimension_semantics<parallel>], iteration_bounds = array<i64: 1>, scalar_prefetch = 0 : i64, scratch_operands = 0 : i64, tpu.core_type = #tpu.core_type<tc>, window_params = [{transform_indices = @transform_0, window_bounds = array<i64: 8, 768>}, {pipeline_mode = #tpu.pipeline_mode<synchronous>, transform_indices = @transform_1, window_bounds = array<i64: 768, 128>}, {pipeline_mode = #tpu.pipeline_mode<synchronous>, transform_indices = @transform_2, window_bounds = array<i64: 1, 128>}, {pipeline_mode = #tpu.pipeline_mode<synchronous>, transform_indices = @transform_3, window_bounds = array<i64: 128, 128>}, {pipeline_mode = #tpu.pipeline_mode<synchronous>, transform_indices = @transform_4, window_bounds = array<i64: 1, 128>}, {transform_indices = @transform_5, window_bounds = array<i64: 8, 128>}, {transform_indices = @transform_6, window_bounds = array<i64: 8, 128>}]} {
    %c0 = arith.constant 0 : index
    %c0_0 = arith.constant 0 : index
    %0 = vector.load %arg1[%c0, %c0_0] : memref<8x768xf32, #tpu.memory_space<vmem>>, vector<8x768xf32>
    %c0_1 = arith.constant 0 : index
    %c0_2 = arith.constant 0 : index
    %1 = vector.load %arg2[%c0_1, %c0_2] : memref<768x128xf32, #tpu.memory_space<vmem>>, vector<768x128xf32>
    %cst = arith.constant dense<0.000000e+00> : vector<8x128xf32>
    %2 = tpu.matmul %0, %1, %cst {dimension_numbers = #tpu.dot_dimension_numbers<[1], [0], [0], [1], [0, 0, 1, 1], [], []>} : vector<8x768xf32>, vector<768x128xf32>, vector<8x128xf32> -> vector<8x128xf32>
    %c0_3 = arith.constant 0 : index
    %c0_4 = arith.constant 0 : index
    %3 = vector.load %arg3[%c0_3, %c0_4] : memref<1x128xf32, #tpu.memory_space<vmem>>, vector<1x128xf32>
    %4 = vector.broadcast %3 : vector<1x128xf32> to vector<8x128xf32>
    %5 = arith.addf %2, %4 : vector<8x128xf32>
    %c0_5 = arith.constant 0 : index
    %c0_6 = arith.constant 0 : index
    %6 = vector.load %arg7[%c0_5, %c0_6] : memref<8x128xf32, #tpu.memory_space<vmem>>, vector<8x128xf32>
    tpu.vector_store %arg7[%c0_5, %c0_6], %5 {strides = array<i32>} : memref<8x128xf32, #tpu.memory_space<vmem>>, vector<8x128xf32>,
    %c0_7 = arith.constant 0 : index
    %c0_8 = arith.constant 0 : index
    %7 = vector.load %arg4[%c0_7, %c0_8] : memref<128x128xf32, #tpu.memory_space<vmem>>, vector<128x128xf32>
    %cst_9 = arith.constant dense<0.000000e+00> : vector<8x128xf32>
    %8 = tpu.matmul %5, %7, %cst_9 {dimension_numbers = #tpu.dot_dimension_numbers<[1], [0], [0], [1], [0, 0, 1, 1], [], []>} : vector<8x128xf32>, vector<128x128xf32>, vector<8x128xf32> -> vector<8x128xf32>
    %c0_10 = arith.constant 0 : index
    %c0_11 = arith.constant 0 : index
    %9 = vector.load %arg5[%c0_10, %c0_11] : memref<1x128xf32, #tpu.memory_space<vmem>>, vector<1x128xf32>
    %10 = vector.broadcast %9 : vector<1x128xf32> to vector<8x128xf32>
    %11 = arith.addf %8, %10 : vector<8x128xf32>
    %c0_12 = arith.constant 0 : index
    %c0_13 = arith.constant 0 : index
    %12 = vector.load %arg6[%c0_12, %c0_13] : memref<8x128xf32, #tpu.memory_space<vmem>>, vector<8x128xf32>
    tpu.vector_store %arg6[%c0_12, %c0_13], %11 {strides = array<i32>} : memref<8x128xf32, #tpu.memory_space<vmem>>, vector<8x128xf32>,
    return
  }
  func.func @transform_0(%arg0: i32) -> (i32, i32) {
    %c0_i32 = arith.constant 0 : i32
    %c0_i32_0 = arith.constant 0 : i32
    return %arg0, %c0_i32 : i32, i32
  }
  func.func @transform_1(%arg0: i32) -> (i32, i32) {
    %c0_i32 = arith.constant 0 : i32
    %c0_i32_0 = arith.constant 0 : i32
    %c0_i32_1 = arith.constant 0 : i32
    return %c0_i32, %c0_i32_0 : i32, i32
  }
  func.func @transform_2(%arg0: i32) -> (i32, i32) {
    %c0_i32 = arith.constant 0 : i32
    %c0_i32_0 = arith.constant 0 : i32
    %c0_i32_1 = arith.constant 0 : i32
    return %c0_i32, %c0_i32_0 : i32, i32
  }
  func.func @transform_3(%arg0: i32) -> (i32, i32) {
    %c0_i32 = arith.constant 0 : i32
    %c0_i32_0 = arith.constant 0 : i32
    %c0_i32_1 = arith.constant 0 : i32
    return %c0_i32, %c0_i32_0 : i32, i32
  }
  func.func @transform_4(%arg0: i32) -> (i32, i32) {
    %c0_i32 = arith.constant 0 : i32
    %c0_i32_0 = arith.constant 0 : i32
    %c0_i32_1 = arith.constant 0 : i32
    return %c0_i32, %c0_i32_0 : i32, i32
  }
  func.func @transform_5(%arg0: i32) -> (i32, i32) {
    %c0_i32 = arith.constant 0 : i32
    %c0_i32_0 = arith.constant 0 : i32
    return %arg0, %c0_i32 : i32, i32
  }
  func.func @transform_6(%arg0: i32) -> (i32, i32) {
    %c0_i32 = arith.constant 0 : i32
    %c0_i32_0 = arith.constant 0 : i32
    return %arg0, %c0_i32 : i32, i32
  }
}

</mosaic_0001>

<bundles_post_ra>
// kernel: hierarchical_cnn_forward.1
= control target key start
LH: loop header
LB: loop body
LE: loop exit
PB: predicated region body
PF: predicated region fallthrough
CT: control target
= control target key end

     0   :  { %vm606_vm0 = vmmov 0   ;;  %s1008_s1 = inlined_call_operand.vmem [shape: f32[768,128], index: 1, kind: input, shape index: {}]   ;;  %s1009_s0 = inlined_call_operand.vmem [shape: f32[8,768], index: 0, kind: input, shape index: {}]   ;;  %s1010_s3 = inlined_call_operand.vmem [shape: f32[128,128], index: 3, kind: input, shape index: {}]   ;;  %s1011_s2 = inlined_call_operand.vmem [shape: f32[1,128], index: 2, kind: input, shape index: {}]   ;;  %s1012_s6 = inlined_call_operand.vmem [shape: f32[8,128], index: 6, kind: output, shape index: {1}]   ;;  %s1013_s4 = inlined_call_operand.vmem [shape: f32[1,128], index: 4, kind: input, shape index: {}]   ;;  %s1014_s5 = inlined_call_operand.vmem [shape: f32[8,128], index: 5, kind: output, shape index: {0}]  }
   0x1   :  { %v59_v0 = vld [vmem:[%s1008_s1 + $0xf8] sm:$0xff]  ;;  %v58_v2 = vld [vmem:[%s1008_s1 + $0xf0] sm:$0xff]  ;;  %v57_v6 = vld [vmem:[%s1008_s1 + $0xe8] sm:$0xff] }
   0x2   :  { %v43_v1 = vld [vmem:[%s1008_s1 + $0x78] sm:$0xff]  ;;  %446 = vmatprep.subr.mxu0 %v59_v0  ;;  %v42_v4 = vld [vmem:[%s1008_s1 + $0x70] sm:$0xff]  ;;  %v41_v8 = vld [vmem:[%s1008_s1 + $0x68] sm:$0xff] }
   0x3   :  { %v91_v3 = vld [vmem:[%s1008_s1 + $0x1f8] sm:$0xff]  ;;  %447 = vmatpush3.msra.mxu0 %v43_v1  ;;  %v90_v7 = vld [vmem:[%s1008_s1 + $0x1f0] sm:$0xff]  ;;  %v89_v10 = vld [vmem:[%s1008_s1 + $0x1e8] sm:$0xff] }
   0x4   :  { %v75_v5 = vld [vmem:[%s1008_s1 + $0x178] sm:$0xff]  ;;  %481 = vmatprep.subr.mxu1 %v91_v3  ;;  %448 = vmatprep.subr.mxu0 %v58_v2  ;;  %v74_v9 = vld [vmem:[%s1008_s1 + $0x170] sm:$0xff]  ;;  %v56_v11 = vld [vmem:[%s1008_s1 + $0xe0] sm:$0xff] }
   0x5   :  { %482 = vmatpush3.msra.mxu1 %v75_v5  ;;  %449 = vmatpush3.msra.mxu0 %v42_v4  ;;  %v73_v12 = vld [vmem:[%s1008_s1 + $0x168] sm:$0xff]  ;;  %v40_v13 = vld [vmem:[%s1008_s1 + $0x60] sm:$0xff]  ;;  %v55_v15 = vld [vmem:[%s1008_s1 + $0xd8] sm:$0xff] }
   0x6   :  { %483 = vmatprep.subr.mxu1 %v90_v7  ;;  %450 = vmatprep.subr.mxu0 %v57_v6  ;;  %v88_v14 = vld [vmem:[%s1008_s1 + $0x1e0] sm:$0xff]  ;;  %v39_v17 = vld [vmem:[%s1008_s1 + $0x58] sm:$0xff]  ;;  %v54_v19 = vld [vmem:[%s1008_s1 + $0xd0] sm:$0xff] }
   0x7   :  { %484 = vmatpush3.msra.mxu1 %v74_v9  ;;  %451 = vmatpush3.msra.mxu0 %v41_v8  ;;  %v72_v16 = vld [vmem:[%s1008_s1 + $0x160] sm:$0xff]  ;;  %v87_v18 = vld [vmem:[%s1008_s1 + $0x1d8] sm:$0xff]  ;;  %v38_v21 = vld [vmem:[%s1008_s1 + $0x50] sm:$0xff] }
   0x8   :  { %485 = vmatprep.subr.mxu1 %v89_v10  ;;  %452 = vmatprep.subr.mxu0 %v56_v11  ;;  %v71_v20 = vld [vmem:[%s1008_s1 + $0x158] sm:$0xff]  ;;  %v86_v22 = vld [vmem:[%s1008_s1 + $0x1d0] sm:$0xff]  ;;  %v53_v23 = vld [vmem:[%s1008_s1 + $0xc8] sm:$0xff] }
   0x9   :  { %486 = vmatpush3.msra.mxu1 %v73_v12  ;;  %453 = vmatpush3.msra.mxu0 %v40_v13  ;;  %v70_v24 = vld [vmem:[%s1008_s1 + $0x150] sm:$0xff]  ;;  %v37_v25 = vld [vmem:[%s1008_s1 + $0x48] sm:$0xff]  ;;  %v52_v27 = vld [vmem:[%s1008_s1 + $0xc0] sm:$0xff] }
   0xa   :  { %487 = vmatprep.subr.mxu1 %v88_v14  ;;  %454 = vmatprep.subr.mxu0 %v55_v15  ;;  %v85_v26 = vld [vmem:[%s1008_s1 + $0x1c8] sm:$0xff]  ;;  %v36_v29 = vld [vmem:[%s1008_s1 + $0x40] sm:$0xff]  ;;  %v51_v31 = vld [vmem:[%s1008_s1 + $0xb8] sm:$0xff] }
   0xb   :  { %488 = vmatpush3.msra.mxu1 %v72_v16  ;;  %455 = vmatpush3.msra.mxu0 %v39_v17  ;;  %v69_v28 = vld [vmem:[%s1008_s1 + $0x148] sm:$0xff]  ;;  %v84_v30 = vld [vmem:[%s1008_s1 + $0x1c0] sm:$0xff]  ;;  %v35_v33 = vld [vmem:[%s1008_s1 + $0x38] sm:$0xff] }
   0xc   :  { %489 = vmatprep.subr.mxu1 %v87_v18  ;;  %456 = vmatprep.subr.mxu0 %v54_v19  ;;  %v68_v32 = vld [vmem:[%s1008_s1 + $0x140] sm:$0xff]  ;;  %v83_v34 = vld [vmem:[%s1008_s1 + $0x1b8] sm:$0xff]  ;;  %v50_v35 = vld [vmem:[%s1008_s1 + $0xb0] sm:$0xff] }
   0xd   :  { %490 = vmatpush3.msra.mxu1 %v71_v20  ;;  %457 = vmatpush3.msra.mxu0 %v38_v21  ;;  %v67_v36 = vld [vmem:[%s1008_s1 + $0x138] sm:$0xff]  ;;  %v34_v37 = vld [vmem:[%s1008_s1 + $0x30] sm:$0xff]  ;;  %v49_v39 = vld [vmem:[%s1008_s1 + $0xa8] sm:$0xff] }
   0xe   :  { %491 = vmatprep.subr.mxu1 %v86_v22  ;;  %458 = vmatprep.subr.mxu0 %v53_v23  ;;  %v82_v38 = vld [vmem:[%s1008_s1 + $0x1b0] sm:$0xff]  ;;  %v33_v41 = vld [vmem:[%s1008_s1 + $0x28] sm:$0xff]  ;;  %v48_v43 = vld [vmem:[%s1008_s1 + $0xa0] sm:$0xff] }
   0xf   :  { %492 = vmatpush3.msra.mxu1 %v70_v24  ;;  %459 = vmatpush3.msra.mxu0 %v37_v25  ;;  %v66_v40 = vld [vmem:[%s1008_s1 + $0x130] sm:$0xff]  ;;  %v81_v42 = vld [vmem:[%s1008_s1 + $0x1a8] sm:$0xff]  ;;  %v32_v45 = vld [vmem:[%s1008_s1 + $0x20] sm:$0xff] }
  0x10   :  { %493 = vmatprep.subr.mxu1 %v85_v26  ;;  %460 = vmatprep.subr.mxu0 %v52_v27  ;;  %v65_v44 = vld [vmem:[%s1008_s1 + $0x128] sm:$0xff]  ;;  %v80_v46 = vld [vmem:[%s1008_s1 + $0x1a0] sm:$0xff]  ;;  %v47_v47 = vld [vmem:[%s1008_s1 + $0x98] sm:$0xff] }
  0x11   :  { %494 = vmatpush3.msra.mxu1 %v69_v28  ;;  %461 = vmatpush3.msra.mxu0 %v36_v29  ;;  %v64_v48 = vld [vmem:[%s1008_s1 + $0x120] sm:$0xff]  ;;  %v31_v49 = vld [vmem:[%s1008_s1 + $0x18] sm:$0xff]  ;;  %v46_v51 = vld [vmem:[%s1008_s1 + $0x90] sm:$0xff] }
  0x12   :  { %495 = vmatprep.subr.mxu1 %v84_v30  ;;  %462 = vmatprep.subr.mxu0 %v51_v31  ;;  %v79_v50 = vld [vmem:[%s1008_s1 + $0x198] sm:$0xff]  ;;  %v30_v53 = vld [vmem:[%s1008_s1 + $0x10] sm:$0xff]  ;;  %v45_v55 = vld [vmem:[%s1008_s1 + $0x88] sm:$0xff] }
  0x13   :  { %496 = vmatpush3.msra.mxu1 %v68_v32  ;;  %463 = vmatpush3.msra.mxu0 %v35_v33  ;;  %v63_v52 = vld [vmem:[%s1008_s1 + $0x118] sm:$0xff]  ;;  %v78_v54 = vld [vmem:[%s1008_s1 + $0x190] sm:$0xff]  ;;  %v29_v57 = vld [vmem:[%s1008_s1 + $0x8] sm:$0xff] }
  0x14   :  { %497 = vmatprep.subr.mxu1 %v83_v34  ;;  %464 = vmatprep.subr.mxu0 %v50_v35  ;;  %v62_v56 = vld [vmem:[%s1008_s1 + $0x110] sm:$0xff]  ;;  %v77_v58 = vld [vmem:[%s1008_s1 + $0x188] sm:$0xff]  ;;  %v44_v59 = vld [vmem:[%s1008_s1 + $0x80] sm:$0xff] }
  0x15   :  { %498 = vmatpush3.msra.mxu1 %v67_v36  ;;  %465 = vmatpush3.msra.mxu0 %v34_v37  ;;  %v23_v60 = vld [vmem:[%s1009_s0 + $0x8] sm:$0xff]  ;;  %v28_v61 = vld [vmem:[%s1008_s1] sm:$0xff]  ;;  %v123_v1 = vld [vmem:[%s1008_s1 + $0x2f8] sm:$0xff] }
  0x16   :  { %499 = vmatprep.subr.mxu1 %v82_v38  ;;  %466 = vmatprep.subr.mxu0 %v49_v39  ;;  %v61_v62 = vld [vmem:[%s1008_s1 + $0x108] sm:$0xff]  ;;  %v22_v63 = vld [vmem:[%s1009_s0] sm:$0xff]  ;;  %v25_v3 = vld [vmem:[%s1009_s0 + $0x18] sm:$0xff]  ;;  %v605_v38 = vmov 0.0  }
  0x17   :  { %500 = vmatpush3.msra.mxu1 %v66_v40  ;;  %467 = vmatpush3.msra.mxu0 %v33_v41  ;;  %v76_v0 = vld [vmem:[%s1008_s1 + $0x180] sm:$0xff]  ;;  %v107_v4 = vld [vmem:[%s1008_s1 + $0x278] sm:$0xff]  ;;  %v24_v5 = vld [vmem:[%s1009_s0 + $0x10] sm:$0xff] }
  0x18   :  { %501 = vmatprep.subr.mxu1 %v81_v42  ;;  %468 = vmatprep.subr.mxu0 %v48_v43  ;;  %v60_v2 = vld [vmem:[%s1008_s1 + $0x100] sm:$0xff]  ;;  %v122_v6 = vld [vmem:[%s1008_s1 + $0x2f0] sm:$0xff]  ;;  %v27_v8 = vld [vmem:[%s1009_s0 + $0x28] sm:$0xff] }
  0x19   :  { %502 = vmatpush3.msra.mxu1 %v65_v44  ;;  %469 = vmatpush3.msra.mxu0 %v32_v45  ;;  %v106_v7 = vld [vmem:[%s1008_s1 + $0x270] sm:$0xff]  ;;  %v121_v9 = vld [vmem:[%s1008_s1 + $0x2e8] sm:$0xff]  ;;  %v120_v11 = vld [vmem:[%s1008_s1 + $0x2e0] sm:$0xff] }
  0x1a   :  { %503 = vmatprep.subr.mxu1 %v80_v46  ;;  %470 = vmatprep.subr.mxu0 %v47_v47  ;;  %v105_v10 = vld [vmem:[%s1008_s1 + $0x268] sm:$0xff]  ;;  %v104_v12 = vld [vmem:[%s1008_s1 + $0x260] sm:$0xff]  ;;  %v119_v13 = vld [vmem:[%s1008_s1 + $0x2d8] sm:$0xff] }
  0x1b   :  { %504 = vmatpush3.msra.mxu1 %v64_v48  ;;  %471 = vmatpush3.msra.mxu0 %v31_v49  ;;  %v103_v14 = vld [vmem:[%s1008_s1 + $0x258] sm:$0xff]  ;;  %v118_v15 = vld [vmem:[%s1008_s1 + $0x2d0] sm:$0xff]  ;;  %v117_v17 = vld [vmem:[%s1008_s1 + $0x2c8] sm:$0xff] }
  0x1c   :  { %505 = vmatprep.subr.mxu1 %v79_v50  ;;  %472 = vmatprep.subr.mxu0 %v46_v51  ;;  %v102_v16 = vld [vmem:[%s1008_s1 + $0x250] sm:$0xff]  ;;  %v101_v18 = vld [vmem:[%s1008_s1 + $0x248] sm:$0xff]  ;;  %v116_v19 = vld [vmem:[%s1008_s1 + $0x2c0] sm:$0xff] }
  0x1d   :  { %506 = vmatpush3.msra.mxu1 %v63_v52  ;;  %473 = vmatpush3.msra.mxu0 %v30_v53  ;;  %v100_v20 = vld [vmem:[%s1008_s1 + $0x240] sm:$0xff]  ;;  %v115_v21 = vld [vmem:[%s1008_s1 + $0x2b8] sm:$0xff]  ;;  %v114_v23 = vld [vmem:[%s1008_s1 + $0x2b0] sm:$0xff] }
  0x1e   :  { %507 = vmatprep.subr.mxu1 %v78_v54  ;;  %474 = vmatprep.subr.mxu0 %v45_v55  ;;  %v99_v22 = vld [vmem:[%s1008_s1 + $0x238] sm:$0xff]  ;;  %v98_v24 = vld [vmem:[%s1008_s1 + $0x230] sm:$0xff]  ;;  %v113_v25 = vld [vmem:[%s1008_s1 + $0x2a8] sm:$0xff] }
  0x1f   :  { %508 = vmatpush3.msra.mxu1 %v62_v56  ;;  %475 = vmatpush3.msra.mxu0 %v29_v57  ;;  %v97_v26 = vld [vmem:[%s1008_s1 + $0x228] sm:$0xff]  ;;  %v112_v27 = vld [vmem:[%s1008_s1 + $0x2a0] sm:$0xff]  ;;  %v111_v29 = vld [vmem:[%s1008_s1 + $0x298] sm:$0xff] }
  0x20   :  { %509 = vmatprep.subr.mxu1 %v77_v58  ;;  %476 = vmatprep.subr.mxu0 %v44_v59  ;;  %v96_v28 = vld [vmem:[%s1008_s1 + $0x220] sm:$0xff]  ;;  %v95_v30 = vld [vmem:[%s1008_s1 + $0x218] sm:$0xff]  ;;  %v110_v31 = vld [vmem:[%s1008_s1 + $0x290] sm:$0xff] }
  0x21   :  { %195 = vmatprep.mubr.f32.mxu0 %v23_v60  ;;  %477 = vmatpush3.msra.mxu0 %v28_v61  ;;  %v94_v32 = vld [vmem:[%s1008_s1 + $0x210] sm:$0xff]  ;;  %v109_v33 = vld [vmem:[%s1008_s1 + $0x288] sm:$0xff]  ;;  %v108_v35 = vld [vmem:[%s1008_s1 + $0x280] sm:$0xff] }
  0x22   :  { %510 = vmatpush3.msra.mxu1 %v61_v62  ;;  %196 = vmatmul.mubr.f32.vlgmr.msra.gmra.mxu0 %v22_v63  ;;  %v93_v34 = vld [vmem:[%s1008_s1 + $0x208] sm:$0xff]  ;;  %v92_v36 = vld [vmem:[%s1008_s1 + $0x200] sm:$0xff]  ;;  %v357_v39 = vld [vmem:[%s1010_s3 + $0x78] sm:$0xff] }
  0x23   :  { %511 = vmatprep.subr.mxu1 %v76_v0  ;;  %516 = vmatprep.subr.mxu0 %v123_v1  ;;  %v26_v37 = vld [vmem:[%s1009_s0 + $0x20] sm:$0xff]  ;;  %v356_v40 = vld [vmem:[%s1010_s3 + $0x70] sm:$0xff]  ;;  %v355_v41 = vld [vmem:[%s1010_s3 + $0x68] sm:$0xff] }
  0x24   :  { %512 = vmatpush3.msra.mxu1 %v60_v2  ;;  %265 = vmatprep.mubr.f32.mxu1 %v25_v3  ;;  %v354_v42 = vld [vmem:[%s1010_s3 + $0x60] sm:$0xff]  ;;  %v353_v43 = vld [vmem:[%s1010_s3 + $0x58] sm:$0xff]  ;;  %v352_v44 = vld [vmem:[%s1010_s3 + $0x50] sm:$0xff] }
  0x25   :  { %517 = vmatpush3.msra.mxu0 %v107_v4  ;;  %266 = vmatmul.mubr.f32.vlgmr.msra.gmra.mxu1 %v24_v5  ;;  %v351_v45 = vld [vmem:[%s1010_s3 + $0x48] sm:$0xff]  ;;  %v350_v46 = vld [vmem:[%s1010_s3 + $0x40] sm:$0xff]  ;;  %v349_v47 = vld [vmem:[%s1010_s3 + $0x38] sm:$0xff] }
  0x26   :  { %518 = vmatprep.subr.mxu0 %v122_v6  ;;  %335 = vmatprep.mubr.f32.mxu0 %v27_v8  ;;  %v348_v48 = vld [vmem:[%s1010_s3 + $0x30] sm:$0xff]  ;;  %v347_v49 = vld [vmem:[%s1010_s3 + $0x28] sm:$0xff]  ;;  %v346_v50 = vld [vmem:[%s1010_s3 + $0x20] sm:$0xff] }
  0x27   :  { %519 = vmatpush3.msra.mxu0 %v106_v7  ;;  %568 = vmatprep.subr.mxu1 %v605_v38  ;;  %v345_v51 = vld [vmem:[%s1010_s3 + $0x18] sm:$0xff]  ;;  %v344_v52 = vld [vmem:[%s1010_s3 + $0x10] sm:$0xff]  ;;  %v343_v53 = vld [vmem:[%s1010_s3 + $0x8] sm:$0xff] }
  0x28   :  { %520 = vmatprep.subr.mxu0 %v121_v9  ;;  %569 = vmatpush3.msra.mxu1 %v357_v39  ;;  %v342_v54 = vld [vmem:[%s1010_s3] sm:$0xff] }
  0x29   :  { %521 = vmatpush3.msra.mxu0 %v105_v10  ;;  %570 = vmatprep.subr.mxu1 %v605_v38  ;;  %v444_v59 = vld [vmem:[%s1011_s2] ss:$0 sm:$0xff] }
  0x2a   :  { %522 = vmatprep.subr.mxu0 %v120_v11  ;;  %571 = vmatpush3.msra.mxu1 %v356_v40  ;;  %v445_v4 = vld [vmem:[%s1013_s4] ss:$0 sm:$0xff] }
  0x2b   :  { %523 = vmatpush3.msra.mxu0 %v104_v12  ;;  %572 = vmatprep.subr.mxu1 %v605_v38 }
  0x2c   :  { %524 = vmatprep.subr.mxu0 %v119_v13  ;;  %573 = vmatpush3.msra.mxu1 %v355_v41 }
  0x2d   :  { %525 = vmatpush3.msra.mxu0 %v103_v14  ;;  %574 = vmatprep.subr.mxu1 %v605_v38 }
  0x2e   :  { %526 = vmatprep.subr.mxu0 %v118_v15  ;;  %575 = vmatpush3.msra.mxu1 %v354_v42 }
  0x2f   :  { %527 = vmatpush3.msra.mxu0 %v102_v16  ;;  %576 = vmatprep.subr.mxu1 %v605_v38 }
  0x30   :  { %528 = vmatprep.subr.mxu0 %v117_v17  ;;  %577 = vmatpush3.msra.mxu1 %v353_v43 }
  0x31   :  { %529 = vmatpush3.msra.mxu0 %v101_v18  ;;  %578 = vmatprep.subr.mxu1 %v605_v38 }
  0x32   :  { %530 = vmatprep.subr.mxu0 %v116_v19  ;;  %579 = vmatpush3.msra.mxu1 %v352_v44 }
  0x33   :  { %531 = vmatpush3.msra.mxu0 %v100_v20  ;;  %580 = vmatprep.subr.mxu1 %v605_v38 }
  0x34   :  { %532 = vmatprep.subr.mxu0 %v115_v21  ;;  %581 = vmatpush3.msra.mxu1 %v351_v45 }
  0x35   :  { %533 = vmatpush3.msra.mxu0 %v99_v22  ;;  %582 = vmatprep.subr.mxu1 %v605_v38 }
  0x36   :  { %534 = vmatprep.subr.mxu0 %v114_v23  ;;  %583 = vmatpush3.msra.mxu1 %v350_v46 }
  0x37   :  { %535 = vmatpush3.msra.mxu0 %v98_v24  ;;  %584 = vmatprep.subr.mxu1 %v605_v38 }
  0x38   :  { %536 = vmatprep.subr.mxu0 %v113_v25  ;;  %585 = vmatpush3.msra.mxu1 %v349_v47 }
  0x39   :  { %537 = vmatpush3.msra.mxu0 %v97_v26  ;;  %586 = vmatprep.subr.mxu1 %v605_v38 }
  0x3a   :  { %538 = vmatprep.subr.mxu0 %v112_v27  ;;  %587 = vmatpush3.msra.mxu1 %v348_v48 }
  0x3b   :  { %539 = vmatpush3.msra.mxu0 %v96_v28  ;;  %588 = vmatprep.subr.mxu1 %v605_v38 }
  0x3c   :  { %540 = vmatprep.subr.mxu0 %v111_v29  ;;  %589 = vmatpush3.msra.mxu1 %v347_v49 }
  0x3d   :  { %541 = vmatpush3.msra.mxu0 %v95_v30  ;;  %590 = vmatprep.subr.mxu1 %v605_v38 }
  0x3e   :  { %542 = vmatprep.subr.mxu0 %v110_v31  ;;  %591 = vmatpush3.msra.mxu1 %v346_v50 }
  0x3f   :  { %543 = vmatpush3.msra.mxu0 %v94_v32  ;;  %592 = vmatprep.subr.mxu1 %v605_v38 }
  0x40   :  { %544 = vmatprep.subr.mxu0 %v109_v33  ;;  %593 = vmatpush3.msra.mxu1 %v345_v51 }
  0x41   :  { %545 = vmatpush3.msra.mxu0 %v93_v34  ;;  %594 = vmatprep.subr.mxu1 %v605_v38 }
  0x42   :  { %546 = vmatprep.subr.mxu0 %v108_v35  ;;  %595 = vmatpush3.msra.mxu1 %v344_v52 }
  0x43   :  { %547 = vmatpush3.msra.mxu0 %v92_v36  ;;  %596 = vmatprep.subr.mxu1 %v605_v38 }
  0x44   :  { %336 = vmatmul.mubr.f32.vlgmr.msra.gmra.mxu0 %v26_v37  ;;  %597 = vmatpush3.msra.mxu1 %v343_v53 }
  0x45   :  { %598 = vmatprep.subr.mxu1 %v605_v38  ;;  %600 = vmatprep.mubr.msk.f32.mxu1 %vm606_vm0, %v605_v38 }
  0x46   :  { %599 = vmatpush3.msra.mxu1 %v342_v54 }
  0xe2   :  { %v478_v55 = vpop.f32.mrf.mxu0 }
  0xe4   :  { %v479_v56 = vpop.f32.mrf.mxu0 }
  0xe5   :  { %v513_v57 = vpop.f32.mrf.mxu1  ;;  %v480_v58 = vadd.f32 %v479_v56, %v478_v55 }
  0xe7   :  { %v514_v60 = vpop.f32.mrf.mxu1  ;;  %v198_v61 = vadd.f32 %v480_v58, %v444_v59 }
  0xe8   :  { %v515_v62 = vadd.f32 %v514_v60, %v513_v57 }
  0xea   :  { %v268_v1 = vadd.f32 %v515_v62, %v198_v61 }
 0x104   :  { %v548_v63 = vpop.f32.mrf.mxu0 }
 0x106   :  { %v549_v0 = vpop.f32.mrf.mxu0 }
 0x107   :  { %v550_v2 = vadd.f32 %v549_v0, %v548_v63 }
 0x109   :  { %v338_v3 = vadd.f32 %v550_v2, %v268_v1 }
 0x10b   :  { %341 = vst [vmem:[%s1012_s6] sm:$0xff] %v338_v3  ;;  %601 = vmatmul.mubr.f32.vlgmr.msra.gmra.mxu1 %v338_v3 }
 0x1cb   :  { %v431_v5 = vpop.f32.mrf.mxu1 }
 0x1cc   :  { %v432_v6 = vadd.f32 %v445_v4, %v431_v5 }
 0x1cd   :  { %v602_v7 = vpop.f32.mrf.mxu1 }
 0x1ce   :  { %435 = vst [vmem:[%s1014_s5] sm:$0xff] %v432_v6 }

</bundles_post_ra>
